<compile_context>
chip_gen: v7x
topology: tpu7x:2x2x1
jax: 0.10.0
libtpu: 0.0.40
codegen_flags: <defaults>
</compile_context>

<pallas_src>
import math

import jax
import jax.numpy as jnp
from jax.experimental import pallas as pl
from jax.experimental.pallas import tpu as pltpu

_SQRT2 = math.sqrt(2.0)
_LANE = 128
_SUB = 8


def _round_up(a: int, b: int) -> int:
    return ((a + b - 1) // b) * b


def _gelu_exact(x):
    # PyTorch F.gelu default ("none" approximation) = exact erf form, in f32.
    return 0.5 * x * (1.0 + jax.lax.erf(x / _SQRT2))


def _vmem_capacity_bytes() -> int:
    try:
        info = pltpu.get_tpu_info()
        cap = int(getattr(info, "vmem_capacity_bytes", 0))
        if cap > 0:
            return cap
    except Exception:
        pass
    return 64 * 1024 * 1024  # conservative: v7x per-TensorCore VMEM


# ---------------------------------------------------------------------------
# General path kernels: MXU matmul + bias + gelu, output permute fused.
# ---------------------------------------------------------------------------
def _linear_gelu_permute_wholek_kernel(x_ref, w_ref, b_ref, o_ref):
    # x tile: (ts, K), w panel: (K, tn) -> single MXU pass, f32 result.
    y = jnp.dot(x_ref[0], w_ref[...], preferred_element_type=jnp.float32)
    y = _gelu_exact(y + b_ref[...].astype(jnp.float32))
    # Fused permute(0, 2, 1): one XLU transpose per output tile, stored
    # lane-dense along S into the (B, N, S) layout.
    o_ref[0] = y.T.astype(o_ref.dtype)


def _linear_gelu_permute_kloop_kernel(x_ref, w_ref, b_ref, o_ref, acc_ref):
    ki = pl.program_id(3)

    @pl.when(ki == 0)
    def _init():
        acc_ref[...] = jnp.zeros_like(acc_ref)

    acc_ref[...] += jnp.dot(
        x_ref[0], w_ref[...], preferred_element_type=jnp.float32
    )

    @pl.when(ki == pl.num_programs(3) - 1)
    def _finalize():
        y = _gelu_exact(acc_ref[...] + b_ref[...].astype(jnp.float32))
        o_ref[0] = y.T.astype(o_ref.dtype)


def _general_path(x, weight, bias):
    B, S, K = x.shape
    N = weight.shape[0]

    vmem_cap = _vmem_capacity_bytes()
    vmem_limit = min(vmem_cap * 3 // 4, vmem_cap - 8 * 1024 * 1024)
    budget = vmem_limit - 4 * 1024 * 1024  # headroom for Mosaic scratch

    def pick(dim, pref):
        """Tile (multiple of 128), preferring tiles that divide `dim` exactly."""
        if dim % _LANE == 0:
            t = min(pref, dim)
            while dim % t:
                t -= _LANE
            return t, dim
        t = min(pref, _round_up(dim, _LANE))
        return t, _round_up(dim, t)

    def fits(ts, tn, tk, whole_k):
        b = 4 * (2 * ts * tk + 2 * tk * tn + 2 * tn * ts + 2 * _SUB * tn)
        if not whole_k:
            b += 4 * ts * tn  # f32 accumulator scratch
        return b <= budget

    K_pad = K if K % _LANE == 0 else _round_up(K, _LANE)

    chosen = None
    # Preferred: whole-K weight panel (no k loop, no accumulator RMW, W fetched
    # once per (b, n-tile) since its block index is constant across si).
    for pref in (512, 384, 256, 128):
        ts, S_p = pick(S, pref)
        tn, N_p = pick(N, pref)
        if fits(ts, tn, K_pad, True):
            chosen = (ts, tn, K_pad, S_p, N_p, K_pad, True)
            break
    if chosen is None:
        for pref_sn, pref_k in ((512, 1024), (512, 512), (256, 512),
                                (256, 256), (128, 256), (128, 128)):
            ts, S_p = pick(S, pref_sn)
            tn, N_p = pick(N, pref_sn)
            tk, K_p2 = pick(K, pref_k)
            if fits(ts, tn, tk, False):
                chosen = (ts, tn, tk, S_p, N_p, K_p2, False)
                break
    assert chosen is not None, "no tiling fits the VMEM budget"
    ts, tn, tk, S_p, N_p, K_p, whole_k = chosen

    # Pad only when a tile does not divide the true dim (the picker avoids
    # padding whenever the dim is already 128-aligned).
    x_p = x
    if (S_p, K_p) != (S, K):
        x_p = jnp.pad(x, ((0, 0), (0, S_p - S), (0, K_p - K)))
    w_kn = weight.T  # (K, N): one-time, small, layout change
    if (K_p, N_p) != (K, N):
        w_kn = jnp.pad(w_kn, ((0, K_p - K), (0, N_p - N)))
    b2d = bias.reshape(1, N)
    if N_p != N:
        b2d = jnp.pad(b2d, ((0, 0), (0, N_p - N)))

    if whole_k:
        grid = (B, N_p // tn, S_p // ts)
        out = pl.pallas_call(
            _linear_gelu_permute_wholek_kernel,
            out_shape=jax.ShapeDtypeStruct((B, N_p, S_p), x.dtype),
            grid=grid,
            in_specs=[
                pl.BlockSpec((1, ts, K_p), lambda b, ni, si: (b, si, 0)),
                # Block index constant across si -> W panel stays resident.
                pl.BlockSpec((K_p, tn), lambda b, ni, si: (0, ni)),
                pl.BlockSpec((1, tn), lambda b, ni, si: (0, ni)),
            ],
            out_specs=pl.BlockSpec((1, tn, ts), lambda b, ni, si: (b, ni, si)),
            compiler_params=pltpu.CompilerParams(
                dimension_semantics=("parallel", "parallel", "arbitrary"),
                vmem_limit_bytes=vmem_limit,
            ),
        )(x_p, w_kn, b2d)
    else:
        grid = (B, N_p // tn, S_p // ts, K_p // tk)
        out = pl.pallas_call(
            _linear_gelu_permute_kloop_kernel,
            out_shape=jax.ShapeDtypeStruct((B, N_p, S_p), x.dtype),
            grid=grid,
            in_specs=[
                pl.BlockSpec((1, ts, tk), lambda b, ni, si, ki: (b, si, ki)),
                pl.BlockSpec((tk, tn), lambda b, ni, si, ki: (ki, ni)),
                pl.BlockSpec((1, tn), lambda b, ni, si, ki: (0, ni)),
            ],
            out_specs=pl.BlockSpec((1, tn, ts),
                                   lambda b, ni, si, ki: (b, ni, si)),
            scratch_shapes=[pltpu.VMEM((ts, tn), jnp.float32)],
            compiler_params=pltpu.CompilerParams(
                dimension_semantics=("parallel", "parallel", "parallel",
                                     "arbitrary"),
                vmem_limit_bytes=vmem_limit,
            ),
        )(x_p, w_kn, b2d)

    if (N_p, S_p) != (N, S):
        out = out[:, :N, :S]
    return out


# ---------------------------------------------------------------------------
# Degenerate path: the actual module (Linear(1, 1)) -> pure VPU, no MXU.
# ---------------------------------------------------------------------------
def _affine_gelu_kernel(scale_ref, shift_ref, x_ref, o_ref):
    x = x_ref[...].astype(jnp.float32)
    y = x * scale_ref[0, 0] + shift_ref[0, 0]
    o_ref[...] = _gelu_exact(y).astype(o_ref.dtype)


def _degenerate_path(x, weight, bias):
    B, S, _ = x.shape
    M = B * S
    scale = weight.reshape(1, 1).astype(jnp.float32)
    shift = bias.reshape(1, 1).astype(jnp.float32)

    if M % _LANE != 0 and M * x.dtype.itemsize > 16 * 1024 * 1024:
        # TODO(synk): huge, non-128-aligned B*S still needs a padded copy; not
        # reachable with the shapes this module is used with.
        pad = _round_up(M, _LANE) - M
        xf = jnp.pad(x.reshape(M), (0, pad))
        M_eff = M + pad
    else:
        xf = x.reshape(M)  # contiguous -> free view, no copy
        M_eff = M

    # Widest lane-dense last dim that divides M (free reshape of a contiguous
    # array); tiny/odd sizes fall back to a single whole-array block, which is
    # always a legal block shape.
    lanes = next((c for c in (1024, 512, 256, 128) if M_eff % c == 0), M_eff)
    rows = M_eff // lanes

    # Row tile: multiple of 8 dividing `rows`, targeting ~2 MiB blocks so the
    # grid-step overhead is amortized and stores are large and unmasked.
    target = max(_SUB, (2 * 1024 * 1024) // (lanes * 4))
    if rows <= target or rows % _SUB != 0:
        row_tile = rows
    else:
        row_tile = (target // _SUB) * _SUB
        while rows % row_tile:
            row_tile -= _SUB

    x2d = xf.reshape(rows, lanes)

    out2d = pl.pallas_call(
        _affine_gelu_kernel,
        out_shape=jax.ShapeDtypeStruct((rows, lanes), x.dtype),
        grid=(rows // row_tile,),
        in_specs=[
            pl.BlockSpec(memory_space=pltpu.MemorySpace.SMEM),
            pl.BlockSpec(memory_space=pltpu.MemorySpace.SMEM),
            pl.BlockSpec((row_tile, lanes), lambda i: (i, 0)),
        ],
        out_specs=pl.BlockSpec((row_tile, lanes), lambda i: (i, 0)),
        compiler_params=pltpu.CompilerParams(
            dimension_semantics=("parallel",),
        ),
    )(scale, shift, x2d)

    flat = out2d.reshape(M_eff)
    if M_eff != M:
        flat = flat[:M]
    # N == 1: permute(0, 2, 1) of the (B, S, 1) result is just a reshape.
    return flat.reshape(B, 1, S)


def linear_gelu_permute(x, weight, bias):
    """v1 = linear(x, W, b); return gelu(v1.permute(0, 2, 1))."""
    _, _, K = x.shape
    N = weight.shape[0]
    if K == 1 and N == 1:
        return _degenerate_path(x, weight, bias)
    return _general_path(x, weight, bias)


def _reference(x, weight, bias):
    v1 = jnp.einsum("bsk,nk->bsn", x, weight,
                    precision=jax.lax.Precision.HIGHEST) + bias
    v3 = jnp.transpose(v1, (0, 2, 1))
    return _gelu_exact(v3)


if __name__ == "__main__":
    key = jax.random.PRNGKey(0)
    keys = jax.random.split(key, 7)

    # Case 1: module-exact shapes (torch.nn.Linear(1, 1), x = randn(1, 1, 1)).
    x0 = jax.random.normal(keys[0], (1, 1, 1), dtype=jnp.float32)
    w0 = jax.random.uniform(keys[1], (1, 1), dtype=jnp.float32,
                            minval=-1.0, maxval=1.0)
    b0 = jax.random.uniform(keys[2], (1,), dtype=jnp.float32,
                            minval=-1.0, maxval=1.0)
    out0 = linear_gelu_permute(x0, w0, b0)
    jax.block_until_ready(out0)
    assert out0.shape == (1, 1, 1), out0.shape
    assert jnp.allclose(out0, _reference(x0, w0, b0), atol=1e-6, rtol=1e-6)

    # Case 2: small batch/seq on the degenerate (VPU) path.
    x1 = jax.random.normal(keys[3], (2, 8, 1), dtype=jnp.float32)
    out1 = linear_gelu_permute(x1, w0, b0)
    jax.block_until_ready(out1)
    assert out1.shape == (2, 1, 8), out1.shape
    assert jnp.allclose(out1, _reference(x1, w0, b0), atol=1e-6, rtol=1e-6)

    # Case 3: larger Linear to exercise the whole-K-panel MXU path.
    # Inputs are exactly representable so the check is precision-independent.
    B2, S2, K2, N2 = 2, 256, 128, 256
    x2 = jax.random.randint(keys[4], (B2, S2, K2), -1, 2).astype(jnp.float32) * 0.125
    w2 = jax.random.randint(keys[5], (N2, K2), -1, 2).astype(jnp.float32) * 0.0625
    b2 = jax.random.randint(keys[6], (N2,), -4, 5).astype(jnp.float32) * 0.125
    out2 = linear_gelu_permute(x2, w2, b2)
    jax.block_until_ready(out2)
    ref2 = _reference(x2, w2, b2)
    assert out2.shape == (B2, N2, S2), out2.shape
    assert jnp.allclose(out2, ref2, atol=1e-4, rtol=1e-4)

    print("KERNEL_OK")
</pallas_src>

<mosaic_0001>
module attributes {stable_mosaic.version = 11 : i64} {
  func.func @_affine_gelu_kernel(%arg0: i32, %arg1: memref<1x1xf32, #tpu.memory_space<smem>>, %arg2: memref<1x1xf32, #tpu.memory_space<smem>>, %arg3: memref<1x1xf32, #tpu.memory_space<vmem>>, %arg4: memref<1x1xf32, #tpu.memory_space<vmem>>) attributes {dimension_semantics = [#tpu.dimension_semantics<parallel>], iteration_bounds = array<i64: 1>, scalar_prefetch = 0 : i64, scratch_operands = 0 : i64, tpu.core_type = #tpu.core_type<tc>, window_params = [{transform_indices = @transform_0, window_bounds = array<i64: 1, 1>}, {transform_indices = @transform_1, window_bounds = array<i64: 1, 1>}, {transform_indices = @transform_2, window_bounds = array<i64: 1, 1>}, {transform_indices = @transform_3, window_bounds = array<i64: 1, 1>}]} {
    %c0 = arith.constant 0 : index
    %c0_0 = arith.constant 0 : index
    %0 = vector.load %arg3[%c0, %c0_0] : memref<1x1xf32, #tpu.memory_space<vmem>>, vector<1x1xf32>
    %c0_1 = arith.constant 0 : index
    %c0_2 = arith.constant 0 : index
    %1 = memref.load %arg1[%c0_1, %c0_2] : memref<1x1xf32, #tpu.memory_space<smem>>
    %2 = vector.broadcast %1 : f32 to vector<1x1xf32>
    %3 = arith.mulf %0, %2 : vector<1x1xf32>
    %c0_3 = arith.constant 0 : index
    %c0_4 = arith.constant 0 : index
    %4 = memref.load %arg2[%c0_3, %c0_4] : memref<1x1xf32, #tpu.memory_space<smem>>
    %5 = vector.broadcast %4 : f32 to vector<1x1xf32>
    %6 = arith.addf %3, %5 : vector<1x1xf32>
    %cst = arith.constant 5.000000e-01 : f32
    %7 = vector.broadcast %cst : f32 to vector<1x1xf32>
    %8 = arith.mulf %7, %6 : vector<1x1xf32>
    %cst_5 = arith.constant 1.41421354 : f32
    %9 = vector.broadcast %cst_5 : f32 to vector<1x1xf32>
    %10 = arith.divf %6, %9 : vector<1x1xf32>
    %11 = math.erf %10 : vector<1x1xf32>
    %cst_6 = arith.constant 1.000000e+00 : f32
    %12 = vector.broadcast %cst_6 : f32 to vector<1x1xf32>
    %13 = arith.addf %12, %11 : vector<1x1xf32>
    %14 = arith.mulf %8, %13 : vector<1x1xf32>
    %c0_7 = arith.constant 0 : index
    %c0_8 = arith.constant 0 : index
    %15 = vector.load %arg4[%c0_7, %c0_8] : memref<1x1xf32, #tpu.memory_space<vmem>>, vector<1x1xf32>
    tpu.vector_store %arg4[%c0_7, %c0_8], %14 {strides = array<i32>} : memref<1x1xf32, #tpu.memory_space<vmem>>, vector<1x1xf32>,
    return
  }
  func.func @transform_0(%arg0: i32) -> (i32, i32) {
    %c0_i32 = arith.constant 0 : i32
    %c0_i32_0 = arith.constant 0 : i32
    %c0_i32_1 = arith.constant 0 : i32
    return %c0_i32, %c0_i32_0 : i32, i32
  }
  func.func @transform_1(%arg0: i32) -> (i32, i32) {
    %c0_i32 = arith.constant 0 : i32
    %c0_i32_0 = arith.constant 0 : i32
    %c0_i32_1 = arith.constant 0 : i32
    return %c0_i32, %c0_i32_0 : i32, i32
  }
  func.func @transform_2(%arg0: i32) -> (i32, i32) {
    %c0_i32 = arith.constant 0 : i32
    %c0_i32_0 = arith.constant 0 : i32
    return %arg0, %c0_i32 : i32, i32
  }
  func.func @transform_3(%arg0: i32) -> (i32, i32) {
    %c0_i32 = arith.constant 0 : i32
    %c0_i32_0 = arith.constant 0 : i32
    return %arg0, %c0_i32 : i32, i32
  }
}

</mosaic_0001>

<bundles_post_ra>
// kernel: tpu_custom_call.1
= control target key start
LH: loop header
LB: loop body
LE: loop exit
PB: predicated region body
PF: predicated region fallthrough
CT: control target
= control target key end

     0   :  { %s117_s0 = inlined_call_operand.<no memory space> [shape: f32[1,1], index: 0, kind: input, shape index: {}]   ;;  %s118_s1 = inlined_call_operand.<no memory space> [shape: f32[1,1], index: 1, kind: input, shape index: {}]   ;;  %s119_s2 = inlined_call_operand.<no memory space> [shape: f32[1,1], index: 2, kind: input, shape index: {}]   ;;  %s120_s3 = inlined_call_operand.hbm [shape: f32[1,1], index: 3, kind: output, shape index: {}]  }
   0x1   :  { %v10_v0 = vstv %s119_s2 }
   0x2   :  { %11 = vst [vmem:[#allocation4] sm:$0x1] %v10_v0 }
   0x3   :  { %v21_v2 = vstv %s117_s0  ;;  %v24_v3 = vstv %s118_s1 }
   0x9   :  { %v19_v1 = vld [vmem:[#allocation4] sm:$0x1] }
   0xa   :  { %12 = vsyncpa [#allocation6], 0  ;;  %v22_v4 = vmul.f32 %v21_v2, %v19_v1  ;;  %s75_s18 = smov [#allocation5]   ;;  %vm32_vm0 = vcmask 0  }
   0xb   :  { %s40_s19 = sshll.u32 %s75_s18, 4  ;;  %s41_s19 = int_to_ptr.vmem [resolvable:$true] %s40_s19 }
   0xc   :  { %v25_v5 = vadd.f32 %v24_v3, %v22_v4  ;;  %s51_s2 = scalar_lea.vmem %s41_s19, 16  ;;  %s55_s0 = scalar_lea.vmem %s41_s19, 32 }
   0xd   :  { %p52_p0 = scmp.ne.s32.totalorder %s41_s19, %s51_s2  ;;  %p56_p1 = scmp.lt.s32.totalorder %s41_s19, %s41_s19 }
   0xe   :  { %v28_v6 = vmul.f32 0.70710677, %v25_v5  ;;  %v26_v7 = vmul.f32 0.5, %v25_v5  ;;  %p57_p2 = scmp.lt.s32.totalorder %s55_s0, %s51_s2 }
  0x10   :  { %49 = verf.f32 %v28_v6  ;;  %p58_p3 = por %p57_p2, %p56_p1 }
  0x12   :  { %p59_p4 = pnand %p58_p3, %p52_p0 }
  0x1a   :  { %v50_v8 = vpop.eup %49 }
  0x1b   :  { %v30_v9 = vadd.f32 1.0, %v50_v8 }
  0x1d   :  { %v31_v10 = vmul.f32 %v30_v9, %v26_v7 }
  0x1f   :  { %33 = vst.msk [vmem:[#allocation5] sm:$0x1] %vm32_vm0, %v31_v10 }
  0x20   :  { %62 = shalt.err (!%p59_p4)
}
  0x21   :  { %s63_s21 = scalar_lea.hbm %s120_s3, 16 }
  0x22   :  { %p64_p5 = scmp.ne.s32.totalorder %s120_s3, %s63_s21  ;;  %p67_p6 = scmp.lt.u32.totalorder %s63_s21, %s120_s3 }
  0x24   :  { %p69_p7 = pnand %p67_p6, %p64_p5 }
  0x26   :  { %72 = shalt.err (!%p69_p7)
}
  0x27   :  { %43 = dma.vmem_to_hbm [thread:$0]  %s41_s19, 16, %s120_s3, [#allocation6]  }
  0x28   :  { %73 = dma.done.wait [#allocation6], 16  }
  0x29   :  { %74 = vsyncadd [#allocation6], 4294967280 }
  0x2a   :  { %47 = vsyncpa [#allocation6], 1 }

</bundles_post_ra>
